<compile_context>
chip_gen: v6e
topology: v6e:2x2x1
jax: 0.10.0
libtpu: 0.0.40
codegen_flags: <defaults>
</compile_context>

<pallas_src>
import jax
import jax.numpy as jnp
from jax.experimental import pallas as pl
from jax.experimental.pallas import tpu as pltpu


def _cdiv(a, b):
    return -(-a // b)


# ---------------------------------------------------------------------------
# Kernels
# ---------------------------------------------------------------------------
def _drop_path_kernel(x_ref, s_ref, o_ref):
    # x_ref/o_ref: (Bt, *mid, Tn); s_ref: (Bt, 1, ..., 1) per-sample scale
    # (already in x.dtype).  Pure HBM-bound elementwise stream.
    o_ref[...] = x_ref[...] * s_ref[...]


def _drop_path_residual_kernel(x_ref, s_ref, r_ref, o_ref):
    # Fused `residual + drop_path(x)` — saves a full extra read+write pass.
    o_ref[...] = r_ref[...] + x_ref[...] * s_ref[...]


# ---------------------------------------------------------------------------
# Tiling helpers
# ---------------------------------------------------------------------------
def _hw_budget():
    """(target block bytes, vmem_limit_bytes) tuned per TPU generation."""
    try:
        vmem_cap = int(pltpu.get_tpu_info().vmem_capacity_bytes)
    except Exception:
        vmem_cap = 128 << 20
    if vmem_cap <= (80 << 20):
        # v7x-class: 64 MiB VMEM / TC, ~3.2 TB/s HBM -> bigger blocks to
        # amortize the ~0.35us/step grid overhead; leave headroom below 64 MiB.
        return 6 << 20, 48 << 20
    # v5e / v6e: 128 MiB VMEM, 0.8-1.4 TB/s HBM -> modest blocks are enough.
    return 2 << 20, 32 << 20


def _even_split(total, target, quantum):
    """Tile size (multiple of `quantum`, or == total) close to `target` that
    splits `total` into nearly-equal blocks (avoids a near-empty last block)."""
    if total % quantum != 0 or total <= quantum:
        return total
    cap = max(quantum, (target // quantum) * quantum)
    n_blocks = _cdiv(total, min(total, cap))
    return min(total, _cdiv(total // quantum, n_blocks) * quantum)


def _choose_tiles(shape, itemsize, target_bytes, block_cap_bytes):
    """Pick (Bt, Tn) for block (Bt, *mid_full, Tn).

    Returns None when no legal block fits the VMEM budget; caller falls back
    to plain XLA instead of failing to compile.
    """
    ndim = len(shape)
    B, L = int(shape[0]), int(shape[-1])
    mid_elems = 1
    for d in shape[1:-1]:
        mid_elems *= int(d)
    sub_q = 8 * max(1, 4 // itemsize)  # sublane quantum: f32 8, bf16 16, int8 32

    # Lane axis: tile in 128-lane units only when one sample's trailing slab
    # is larger than the target and L is cleanly divisible by 128.
    row_bytes = mid_elems * L * itemsize
    if row_bytes > target_bytes and L % 128 == 0 and L > 128:
        tn_elems = max(128, target_bytes // max(1, mid_elems * itemsize))
        Tn = _even_split(L, tn_elems, 128)
    else:
        Tn = L
    blk_row_bytes = mid_elems * Tn * itemsize
    if blk_row_bytes > block_cap_bytes:
        # TODO(synk): tile the middle dims for gigantic per-sample slabs.
        return None

    bt_target = max(1, target_bytes // blk_row_bytes)
    if ndim == 2:
        # Bt is the sublane (second-last) dim here: multiple of sub_q or == B.
        Bt = _even_split(B, max(sub_q, (bt_target // sub_q) * sub_q), sub_q)
    else:
        Bt = _even_split(B, bt_target, 1)
    if Bt * blk_row_bytes > block_cap_bytes:
        return None

    # Megacore: prefer >= 2 grid steps when possible so the second TensorCore
    # (v7x has 2 TCs/chip) is not left idle.
    if Bt >= B and Tn >= L and B > 1:
        if ndim > 2:
            Bt = _cdiv(B, 2)
        elif B % sub_q == 0 and B >= 2 * sub_q:
            Bt = _cdiv(B // sub_q, 2) * sub_q
    return int(Bt), int(Tn)


# ---------------------------------------------------------------------------
# Wrapper
# ---------------------------------------------------------------------------
def _drop_path_jax(x, scale, residual):
    """Plain-XLA fallback (tiny inputs / shapes that don't fit the budget)."""
    s = scale.reshape((x.shape[0],) + (1,) * (x.ndim - 1)).astype(x.dtype)
    y = x * s
    return y if residual is None else residual + y


def drop_path(x, drop_prob: float = 0.0, training: bool = False, *, key=None,
              residual=None, min_pallas_bytes: int = 1 << 20,
              block_bytes: int | None = None):
    """JAX/Pallas equivalent of the PyTorch drop_path.

    If `residual` is given, computes the fused `residual + drop_path(x)`.
    NOTE: `input_output_aliases={0: 0}` makes this in-place only when the
    caller donates `x` under jit; otherwise XLA inserts a defensive copy
    (still correct).
    """
    if drop_prob == 0.0 or not training:
        return x if residual is None else residual + x

    keep_prob = 1.0 - float(drop_prob)
    if keep_prob <= 0.0:
        # Every sample dropped.  (The torch reference divides by zero here and
        # yields NaN; zeros match the intended stochastic-depth semantics.)
        z = jnp.zeros_like(x)
        return z if residual is None else residual + z

    if key is None:
        raise ValueError(
            "drop_path with drop_prob > 0 in training mode requires a PRNG key.")
    if residual is not None:
        assert residual.shape == x.shape and residual.dtype == x.dtype, (
            "residual must match x in shape and dtype")

    B = int(x.shape[0])
    # Per-sample Bernoulli(keep_prob): floor(keep_prob + U[0,1)), same as the
    # PyTorch reference.  Tiny (B,) RNG stays in plain JAX; the resulting
    # scale (0 or 1/keep_prob) is cast to x.dtype so the kernel does a single
    # mul with no f32 round-trip for bf16.
    u = jax.random.uniform(key, (B,), dtype=jnp.float32)
    scale = (jnp.floor(keep_prob + u) / keep_prob).astype(x.dtype)  # (B,)

    itemsize = x.dtype.itemsize
    total_bytes = x.size * itemsize
    if x.ndim < 2 or total_bytes < min_pallas_bytes:
        # Launch/grid overhead dominates for tiny activations.
        return _drop_path_jax(x, scale, residual)

    target_default, vmem_limit = _hw_budget()
    n_live = 6 if residual is not None else 4      # double-buffered streams
    block_cap = vmem_limit // (n_live + 1)         # headroom for scale bufs
    target = min(block_bytes or target_default, block_cap)

    tiles = _choose_tiles(x.shape, itemsize, target, block_cap)
    if tiles is None:
        return _drop_path_jax(x, scale, residual)
    Bt, Tn = tiles

    L = int(x.shape[-1])
    mid = tuple(int(d) for d in x.shape[1:-1])
    nmid = len(mid)
    grid = (_cdiv(B, Bt), _cdiv(L, Tn))

    x_block = (Bt,) + mid + (Tn,)
    x_map = lambda i, j, _z=(0,) * nmid: (i,) + _z + (j,)
    s_block = (Bt,) + (1,) * (x.ndim - 1)
    s_map = lambda i, j, _z=(0,) * (x.ndim - 1): (i,) + _z
    s_full = scale.reshape((B,) + (1,) * (x.ndim - 1))

    in_specs = [pl.BlockSpec(x_block, x_map), pl.BlockSpec(s_block, s_map)]
    args = [x, s_full]
    kernel = _drop_path_kernel
    n_stream = 2
    if residual is not None:
        in_specs.append(pl.BlockSpec(x_block, x_map))
        args.append(residual)
        kernel = _drop_path_residual_kernel
        n_stream = 3

    return pl.pallas_call(
        kernel,
        out_shape=jax.ShapeDtypeStruct(x.shape, x.dtype),
        grid_spec=pltpu.PrefetchScalarGridSpec(
            num_scalar_prefetch=0,
            grid=grid,
            in_specs=in_specs,
            out_specs=pl.BlockSpec(x_block, x_map),
        ),
        compiler_params=pltpu.CompilerParams(
            dimension_semantics=("parallel", "parallel"),
            vmem_limit_bytes=vmem_limit),
        input_output_aliases={0: 0},        # in place only when x is donated
        cost_estimate=pl.CostEstimate(
            flops=x.size * (2 if residual is not None else 1),
            transcendentals=0,
            bytes_accessed=n_stream * x.size * itemsize + B * itemsize),
    )(*args)


class DropPath:
    """Drop paths (Stochastic Depth) per sample."""

    def __init__(self, drop_prob=None):
        self.drop_prob = drop_prob
        self.training = True  # mimic nn.Module default-to-train convention
        self.min_pallas_bytes = 1 << 20

    def __call__(self, x, key=None, residual=None):
        return drop_path(x, self.drop_prob or 0.0, self.training, key=key,
                         residual=residual,
                         min_pallas_bytes=self.min_pallas_bytes)


# ---------------------------------------------------------------------------
# Demo / correctness checks
# ---------------------------------------------------------------------------
if __name__ == "__main__":
    root = jax.random.PRNGKey(0)
    kx, kmask, kres, kx2 = jax.random.split(root, 4)

    drop_prob = 0.25
    keep_prob = 1.0 - drop_prob

    # Small NCHW activation (as in dual_convnext's DropPath usage).
    B, C, H, W = 2, 4, 16, 16
    x = jax.random.normal(kx, (B, C, H, W), dtype=jnp.float32)

    # Reference mask (same derivation as inside the wrapper).
    u = jax.random.uniform(kmask, (B,), dtype=jnp.float32)
    mask = jnp.floor(keep_prob + u)
    ref = x * (mask / keep_prob).reshape(B, 1, 1, 1)

    # 1) Pallas path on the native 4-D layout (no (B, N) reshape/relayout).
    out = jax.block_until_ready(
        drop_path(x, drop_prob, True, key=kmask, min_pallas_bytes=0))
    assert out.shape == x.shape and out.dtype == x.dtype
    assert jnp.allclose(out, ref, atol=1e-6, rtol=1e-6), "pallas path mismatch"

    # 2) Fused residual add: y = r + drop_path(x).
    r = jax.random.normal(kres, (B, C, H, W), dtype=jnp.float32)
    out_res = jax.block_until_ready(
        drop_path(x, drop_prob, True, key=kmask, residual=r,
                  min_pallas_bytes=0))
    assert jnp.allclose(out_res, r + ref, atol=1e-6, rtol=1e-6), \
        "residual fusion mismatch"

    # 3) Forced multi-block grids with clipped edge blocks (B=5, L=384).
    x2 = jax.random.normal(kx2, (5, 4, 8, 384), dtype=jnp.float32)
    u2 = jax.random.uniform(kmask, (5,), dtype=jnp.float32)
    ref2 = x2 * (jnp.floor(keep_prob + u2) / keep_prob).reshape(5, 1, 1, 1)
    out2a = jax.block_until_ready(                      # tiles the lane axis
        drop_path(x2, drop_prob, True, key=kmask, min_pallas_bytes=0,
                  block_bytes=32 * 1024))
    out2b = jax.block_until_ready(                      # tiles the batch axis
        drop_path(x2, drop_prob, True, key=kmask, min_pallas_bytes=0,
                  block_bytes=96 * 1024))
    assert jnp.allclose(out2a, ref2, atol=1e-6, rtol=1e-6), "lane-tiled mismatch"
    assert jnp.allclose(out2b, ref2, atol=1e-6, rtol=1e-6), "batch-tiled mismatch"

    # 4) bf16 path (single mul in x.dtype, no f32 round-trip).
    xb = x.astype(jnp.bfloat16)
    ref_b = xb * (mask / keep_prob).astype(jnp.bfloat16).reshape(B, 1, 1, 1)
    out_b = jax.block_until_ready(
        drop_path(xb, drop_prob, True, key=kmask, min_pallas_bytes=0))
    assert jnp.allclose(out_b.astype(jnp.float32), ref_b.astype(jnp.float32),
                        atol=1e-2, rtol=1e-2), "bf16 path mismatch"

    # 5) Module API: tiny input takes the plain-XLA fallback path.
    module = DropPath(drop_prob)
    out_m = jax.block_until_ready(module(x, key=kmask))
    assert jnp.allclose(out_m, ref, atol=1e-6, rtol=1e-6), "fallback mismatch"

    # 6) Eval path is the identity.
    module.training = False
    assert jnp.array_equal(jax.block_until_ready(module(x, key=kmask)), x)

    # 7) drop_prob == 1.0 drops everything -> zeros (no NaNs).
    out_all = jax.block_until_ready(drop_path(x, 1.0, True, key=kmask))
    assert jnp.array_equal(out_all, jnp.zeros_like(x)), \
        "drop_prob=1 must give zeros"

    print("KERNEL_OK")
</pallas_src>

<mosaic_0001>
module attributes {stable_mosaic.version = 11 : i64} {
  func.func @_drop_path_kernel(%arg0: i32, %arg1: i32, %arg2: memref<1x4x16x16xf32, #tpu.memory_space<vmem>>, %arg3: memref<1x1x1x1xf32, #tpu.memory_space<vmem>>, %arg4: memref<1x4x16x16xf32, #tpu.memory_space<vmem>>) attributes {dimension_semantics = [#tpu.dimension_semantics<parallel>, #tpu.dimension_semantics<parallel>], iteration_bounds = array<i64: 2, 1>, scalar_prefetch = 0 : i64, scratch_operands = 0 : i64, tpu.core_type = #tpu.core_type<tc>, window_params = [{transform_indices = @transform_0, window_bounds = array<i64: 1, 4, 16, 16>}, {transform_indices = @transform_1, window_bounds = array<i64: 1, 1, 1, 1>}, {transform_indices = @transform_2, window_bounds = array<i64: 1, 4, 16, 16>}]} {
    %c0 = arith.constant 0 : index
    %c0_0 = arith.constant 0 : index
    %c0_1 = arith.constant 0 : index
    %c0_2 = arith.constant 0 : index
    %0 = vector.load %arg2[%c0, %c0_0, %c0_1, %c0_2] : memref<1x4x16x16xf32, #tpu.memory_space<vmem>>, vector<1x4x16x16xf32>
    %c0_3 = arith.constant 0 : index
    %c0_4 = arith.constant 0 : index
    %c0_5 = arith.constant 0 : index
    %c0_6 = arith.constant 0 : index
    %1 = vector.load %arg3[%c0_3, %c0_4, %c0_5, %c0_6] : memref<1x1x1x1xf32, #tpu.memory_space<vmem>>, vector<1x1x1x1xf32>
    %2 = vector.broadcast %1 : vector<1x1x1x1xf32> to vector<1x4x16x16xf32>
    %3 = arith.mulf %0, %2 : vector<1x4x16x16xf32>
    %c0_7 = arith.constant 0 : index
    %c0_8 = arith.constant 0 : index
    %c0_9 = arith.constant 0 : index
    %c0_10 = arith.constant 0 : index
    %4 = vector.load %arg4[%c0_7, %c0_8, %c0_9, %c0_10] : memref<1x4x16x16xf32, #tpu.memory_space<vmem>>, vector<1x4x16x16xf32>
    tpu.vector_store %arg4[%c0_7, %c0_8, %c0_9, %c0_10], %3 {strides = array<i32>} : memref<1x4x16x16xf32, #tpu.memory_space<vmem>>, vector<1x4x16x16xf32>,
    return
  }
  func.func @transform_0(%arg0: i32, %arg1: i32) -> (i32, i32, i32, i32) {
    %c0_i32 = arith.constant 0 : i32
    %c0_i32_0 = arith.constant 0 : i32
    %c0_i32_1 = arith.constant 0 : i32
    return %arg0, %c0_i32, %c0_i32_0, %arg1 : i32, i32, i32, i32
  }
  func.func @transform_1(%arg0: i32, %arg1: i32) -> (i32, i32, i32, i32) {
    %c0_i32 = arith.constant 0 : i32
    %c0_i32_0 = arith.constant 0 : i32
    %c0_i32_1 = arith.constant 0 : i32
    %c0_i32_2 = arith.constant 0 : i32
    return %arg0, %c0_i32, %c0_i32_0, %c0_i32_1 : i32, i32, i32, i32
  }
  func.func @transform_2(%arg0: i32, %arg1: i32) -> (i32, i32, i32, i32) {
    %c0_i32 = arith.constant 0 : i32
    %c0_i32_0 = arith.constant 0 : i32
    %c0_i32_1 = arith.constant 0 : i32
    return %arg0, %c0_i32, %c0_i32_0, %arg1 : i32, i32, i32, i32
  }
}

</mosaic_0001>

<bundles_post_ra>
// kernel: tpu_custom_call.1
= control target key start
LH: loop header
LB: loop body
LE: loop exit
PB: predicated region body
PF: predicated region fallthrough
CT: control target
= control target key end

     0   :  { %7 = vsyncpa [#allocation3], 0  ;;  %s714_s0 = inlined_call_operand.hbm [shape: f32[2,4,16,16], index: 0, kind: input, shape index: {}, may-alias: {0,2}]   ;;  %s715_s1 = inlined_call_operand.vmem [shape: f32[2,1,1,1], index: 1, kind: input, shape index: {}]   ;;  %s716_s2 = inlined_call_operand.hbm [shape: f32[2,4,16,16], index: 2, kind: output, shape index: {}, may-alias: {0,2}]  }
   0x1   :  { %9 = vsyncpa [#allocation3 + $0x1], 0 }
   0x2   :  { %10 = vsyncpa [#allocation4], 0 }
   0x3   :  { %12 = vsyncpa [#allocation4 + $0x1], 0  ;;  %s555_s9 = smov 0   ;;  %s557_s10 = smov 0  }
   0x4   :  { %s559_s11 = smov 0   ;;  %s561_s12 = smov 0  }
   0x5   :  { %s563_s13 = smov 0   ;;  %s565_s14 = smov 0  }
   0x6 LB: > { %s337_s15 = sadd.s32 4294967295, %s531_s14   ;;  %s338_s16 = sadd.s32 4294967294, %s531_s14   ;;  %s531_s14 = sphi %s565_s14, %s18_s14   ;;  %s527_s13 = sphi %s563_s13, %s727_s13   ;;  %s523_s12 = sphi %s561_s12, %s726_s12   ;;  %s519_s11 = sphi %s559_s11, %s725_s11   ;;  %s515_s10 = sphi %s557_s10, %s724_s10   ;;  %s511_s9 = sphi %s555_s9, %s723_s9  }
   0x7   : > { %s30_s17 = sadd.s32 1, %s527_s13  ;;  %s39_s18 = sadd.s32 1, %s519_s11 }
   0x8   : > { %p32_p0 = scmp.ge.s32.totalorder %s30_s17, 2  ;;  %p46_p1 = scmp.ne.s32.totalorder %s519_s11, %s515_s10 }
   0x9   : > { %p47_p2 = scmp.eq.s32.totalorder %s531_s14, 0  ;;  %p52_p3 = scmp.ne.s32.totalorder %s515_s10, %s511_s9 }
   0xa   : > { %s729_s17 = smov (%p32_p0, %s30_s17), 0  ;;  %p53_p5 = scmp.eq.s32.totalorder %s337_s15, 0 }
   0xb   : > { %p596_p4 = por %p47_p2, %p46_p1  ;;  %s34_s20 = ssub.s32 %s527_s13, %s729_s17 }
   0xc   : > { %p104_p6 = scmp.eq.s32.totalorder %s337_s15, 1  ;;  %p37_p7 = scmp.eq.s32.totalorder %s34_s20, 0 }
   0xd   : > { %p602_p8 = por %p53_p5, %p52_p3  ;;  %p110_p10 = scmp.eq.s32.totalorder %s338_s16, 1 }
   0xe   : > { %p606_p9 = por %p104_p6, %p46_p1  ;;  %p367_p13 = scmp.lt.s32.totalorder %s531_s14, 2 }
   0xf   : > { %s611_s23 = scalar_select %p37_p7, %s519_s11, %s39_s18  }
  0x10   : > { %p613_p11 = por %p110_p10, %p52_p3  ;;  %s130_s25 = sand.u32 1, %s519_s11  }
  0x11   : > { %s341_s26 = sshll.u32 %s130_s25, 6  ;;  %s353_s27 = sshll.u32 %s527_s13, 10 }
  0x12   : > { %s141_s30 = scalar_lea.hbm %s714_s0, %s353_s27  ;;  %s134_s3 = scalar_lea.vmem [#allocation2], %s341_s26 }
  0x13   : > { %s142_s4 = sshll.u32 %s134_s3, 4  ;;  %p626_p0 = pnand %p367_p13, %p596_p4  ;;  %s143_s4 = int_to_ptr.vmem [resolvable:$true] %s142_s4 }
  0x14   : > { %p344_p1 = scmp.ge.s32.totalorder %s531_s14, 1  ;;  %s131_s6 = scalar_lea.sflag [#allocation3], %s130_s25 }
  0x15   : > { %p425_p2 = pneg %p626_p0  ;;  %s436_s7 = scalar_lea.vmem %s143_s4, 1024 }
  0x16   : > { %p437_p3 = scmp.ne.s32.totalorder %s143_s4, %s436_s7  ;;  %s533_s8 = smov [#allocation2]  }
  0x17   : > { %s441_s15 = sshll.u32 %s533_s8, 4  ;;  %s442_s15 = int_to_ptr.vmem [resolvable:$false] %s441_s15 }
  0x18   : > { %p439_p5 = pnand %p437_p3, %p425_p2  ;;  %s443_s16 = scalar_lea.vmem %s442_s15, 2048 }
  0x19   : > { %p444_p7 = scmp.lt.s32.totalorder %s143_s4, %s442_s15  ;;  %p445_p10 = scmp.lt.s32.totalorder %s443_s16, %s436_s7 }
  0x1a   : > { %p440_p6 = pneg %p439_p5 }
  0x1b   : > { %p446_p12 = por %p445_p10, %p444_p7 }
  0x1d   : > { %p447_p4 = pnand %p446_p12, %p440_p6 }
  0x1f   : > { %450 = shalt.err (!%p447_p4)
}
  0x20   : > { %s534_s18 = smov 128   ;;  %s535_s19 = smov 8  }
  0x21   : > { %362 = dma.hbm_to_vmem [thread:$0]  (!%p626_p0), %s141_s30, 1024, %s143_s4, %s131_s6, %s534_s18, %s534_s18, %s535_s19  }
  0x22   : > { %p156_p13 = scmp.lt.s32.totalorder %s531_s14, 3 }
  0x24   : > { %p157_p2 = pnand %p344_p1, %p156_p13 }
  0x25   : > { %s639_s20 = sand.u32 (!%p157_p2), 1, %s515_s10  }
  0x26   : > { %160 = sbr.rel (%p157_p2) target bundleno = 193 (0xc1), region = 28  ;;  %s345_s25 = sshll.u32 (!%p157_p2), %s639_s20, 6 }
  0x27   : > { %s163_s26 = scalar_lea.sflag (!%p157_p2), [#allocation3], %s639_s20  ;;  %s166_s27 = scalar_lea.vmem (!%p157_p2), [#allocation2], %s345_s25 }
  0x2b   : > { %502 = dma.done.wait (%p602_p8), %s163_s26, 1024  }
  0x2c   : > { %504 = vsyncadd (%p602_p8), %s163_s26, 4294966272  ;;  %p190_p12 = scmp.lt.s32.totalorder %s523_s12, 1  ;;  %v536_v0 = vmov 0   ;;  %v193_v2 = vld [vmem:[%s166_s27] sm:$0xff]  ;;  %v194_v3 = vld [vmem:[%s166_s27 + $0x8] sm:$0xff]  ;;  %s354_s21 = sshll.u32 %s523_s12, 10 }
  0x2d   : > { %422 = vset.pattern.permute.xlu0 %v536_v0  ;;  %v195_v4 = vld [vmem:[%s166_s27 + $0x10] sm:$0xff]  ;;  %v196_v5 = vld [vmem:[%s166_s27 + $0x18] sm:$0xff]  ;;  %v197_v6 = vld [vmem:[%s166_s27 + $0x20] sm:$0xff]  ;;  %s189_s4 = scalar_lea.vmem [#allocation5], %s345_s25  ;;  %vm219_vm0 = vcmask 130048   ;;  %s656_s8 = scalar_lea.hbm %s716_s2, %s354_s21 }
  0x2e   : > { %s191_s28 = scalar_select %p190_p12, %s523_s12, 1  ;;  %v198_v7 = vld [vmem:[%s166_s27 + $0x28] sm:$0xff]  ;;  %v199_v8 = vld [vmem:[%s166_s27 + $0x30] sm:$0xff]  ;;  %v200_v9 = vld [vmem:[%s166_s27 + $0x38] sm:$0xff] }
  0x2f   : > { %s243_s5 = sshll.u32 %s189_s4, 4  ;;  %s229_s12 = scalar_lea.sflag [#allocation4], %s639_s20  ;;  %s658_s5 = int_to_ptr.vmem [resolvable:$true] %s243_s5 }
  0x30   : > { %s192_s3 = scalar_lea.vmem %s715_s1, %s191_s28  ;;  %s451_s15 = scalar_lea.vmem %s658_s5, 1024 }
  0x31   : > { %v347_v1 = vld [vmem:[%s192_s3] ss:$0 sm:$0xff]  ;;  %p452_p8 = scmp.ne.s32.totalorder %s658_s5, %s451_s15  ;;  %s537_s16 = smov [#allocation5]  }
  0x32   : > { %208 = vperm.xlu0 %422, %v347_v1   ;;  %s455_s18 = sshll.u32 %s537_s16, 4  ;;  %s456_s18 = int_to_ptr.vmem [resolvable:$false] %s455_s18 }
  0x33   : > { %p453_p0 = pnand %p452_p8, %p606_p9  ;;  %s457_s19 = scalar_lea.vmem %s456_s18, 2048 }
  0x34   : > { %p458_p3 = scmp.lt.s32.totalorder %s658_s5, %s456_s18  ;;  %p459_p5 = scmp.lt.s32.totalorder %s457_s19, %s451_s15 }
  0x35   : > { %p454_p1 = pneg %p453_p0 }
  0x36   : > { %p460_p6 = por %p459_p5, %p458_p3 }
  0x38   : > { %p461_p7 = pnand %p460_p6, %p454_p1 }
  0xad   : > { %v209_v10 = vpop.permute.xlu0 %208 }
  0xae   : > { %v211_v11 = vmul.f32 %v209_v10, %v193_v2  ;;  %v212_v12 = vmul.f32 %v209_v10, %v194_v3  ;;  %v213_v13 = vmul.f32 %v209_v10, %v195_v4  ;;  %v214_v14 = vmul.f32 %v209_v10, %v196_v5 }
  0xaf   : > { %v215_v15 = vmul.f32 %v209_v10, %v197_v6  ;;  %v216_v16 = vmul.f32 %v209_v10, %v198_v7  ;;  %v217_v17 = vmul.f32 %v209_v10, %v199_v8  ;;  %v218_v18 = vmul.f32 %v209_v10, %v200_v9 }
  0xb0   : > { %220 = vst.msk [vmem:[%s189_s4] sm:$0xff] %vm219_vm0, %v211_v11  ;;  %221 = vst.msk [vmem:[%s189_s4 + $0x8] sm:$0xff] %vm219_vm0, %v212_v12 }
  0xb1   : > { %222 = vst.msk [vmem:[%s189_s4 + $0x10] sm:$0xff] %vm219_vm0, %v213_v13  ;;  %223 = vst.msk [vmem:[%s189_s4 + $0x18] sm:$0xff] %vm219_vm0, %v214_v14 }
  0xb2   : > { %224 = vst.msk [vmem:[%s189_s4 + $0x20] sm:$0xff] %vm219_vm0, %v215_v15  ;;  %225 = vst.msk [vmem:[%s189_s4 + $0x28] sm:$0xff] %vm219_vm0, %v216_v16 }
  0xb3   : > { %226 = vst.msk [vmem:[%s189_s4 + $0x30] sm:$0xff] %vm219_vm0, %v217_v17  ;;  %227 = vst.msk [vmem:[%s189_s4 + $0x38] sm:$0xff] %vm219_vm0, %v218_v18 }
  0xb4   : > { %464 = shalt.err (!%p461_p7)
}
  0xb5   : > { %s465_s25 = scalar_lea.hbm %s656_s8, 1024  ;;  %s469_s28 = scalar_lea.hbm %s716_s2, 2048 }
  0xb6   : > { %p466_p10 = scmp.ne.s32.totalorder %s656_s8, %s465_s25  ;;  %p470_p2 = scmp.lt.s32.totalorder %s656_s8, %s716_s2 }
  0xb7   : > { %p471_p12 = scmp.lt.s32.totalorder %s469_s28, %s465_s25 }
  0xb8   : > { %p467_p4 = pnand %p466_p10, %p606_p9 }
  0xb9   : > { %p472_p8 = por %p471_p12, %p470_p2 }
  0xba   : > { %p468_p13 = pneg %p467_p4 }
  0xbc   : > { %p473_p0 = pnand %p472_p8, %p468_p13 }
  0xbe   : > { %476 = shalt.err (!%p473_p0)
}
  0xbf   : > { %s538_s3 = smov 128   ;;  %s539_s21 = smov 8  }
  0xc0   : > { %357 = dma.vmem_to_hbm [thread:$0]  (%p606_p9), %s658_s5, 1024, %s656_s8, %s229_s12, %s538_s3, %s538_s3, %s539_s21  }
  0xc1 PF: > { %s258_s4 = sand.u32 1, %s511_s9   ;;  %p722_p1 = scmp.ge.s32.totalorder %s531_s14, 2 }
  0xc2   : > { %s259_s6 = scalar_lea.sflag [#allocation4], %s258_s4 }
  0xc3   : > { %p364_p3 = pnand %p722_p1, %p613_p11 }
  0xc5   : > { %p365_p5 = pneg %p364_p3 }
  0xc7   : > { %506 = dma.done.wait (%p365_p5), %s259_s6, 1024  }
  0xc8   : > { %508 = vsyncadd (%p365_p5), %s259_s6, 4294966272  ;;  %s18_s14 = sadd.s32 1, %s531_s14   ;;  %s723_s9 = smov %s515_s10 }
  0xc9   : > { %p15_p6 = scmp.ge.s32.totalorder %s18_s14, 4   ;;  %s724_s10 = smov %s519_s11 }
  0xca   : > { %s725_s11 = smov %s611_s23  ;;  %s726_s12 = smov %s527_s13 }
  0xcb   : > { %s727_s13 = smov %s729_s17  ;;  %17 = sbr.rel (!%p15_p6) target bundleno = 6 (0x6), region = 76 }
  0xd0   :  { %264 = vsyncpa [#allocation3], 1 }
  0xd1   :  { %266 = vsyncpa [#allocation3 + $0x1], 1 }
  0xd2   :  { %267 = vsyncpa [#allocation4], 1 }
  0xd3   :  { %269 = vsyncpa [#allocation4 + $0x1], 1 }

</bundles_post_ra>
